<compile_context>
chip_gen: v6e
topology: v6e:2x2x1
jax: 0.10.0
libtpu: 0.0.40
codegen_flags: <defaults>
</compile_context>

<pallas_src>
from functools import partial

import jax
import jax.numpy as jnp
from jax import lax
from jax.experimental import pallas as pl
from jax.experimental.pallas import tpu as pltpu


def _is_pow2(n):
    return n > 0 and (n & (n - 1)) == 0


def _bottleneck_kernel(x_ref, w1_ref, w2_ref, w3_ref, b_ref, o_ref, *, H, W):
    # x_ref : (Cin, L)        channels on sublanes, flattened (img, h, w) on lanes
    # w1_ref: (Pp, Cin)       1x1 conv1 weight, BN1 scale folded, P padded to Pp
    # w2_ref: (3, Pp, 3*Pp)   3x3 conv2 weight grouped by dy; cols = (dx, in-ch)
    # w3_ref: (Cout, Pp)      1x1 conv3 weight, BN3 scale folded
    # b_ref : (2*Pp+Cout, 1)  packed folded BN biases [b1; b2; b3]
    # o_ref : (Cout, L)
    Pp = w1_ref.shape[1 - 1]
    Cout = o_ref.shape[0]
    L = x_ref.shape[1]
    HW = H * W

    b1 = b_ref[0:Pp, :]
    b2 = b_ref[Pp:2 * Pp, :]
    b3 = b_ref[2 * Pp:2 * Pp + Cout, :]

    x = x_ref[...]                                              # (Cin, L)

    # ---- conv1 (1x1) + bn1 + relu -> (Pp, L)
    t1 = jnp.dot(w1_ref[...], x, preferred_element_type=jnp.float32)
    t1 = jnp.maximum(t1 + b1, 0.0)

    # ---- border masks: lane-only (1, L); the jnp.where broadcasts across
    # sublanes.  W and H*W are powers of two here, so mod/div become and/shift.
    pos = lax.broadcasted_iota(jnp.int32, (1, L), 1)
    if _is_pow2(W) and _is_pow2(HW):
        col = pos & (W - 1)
        row = (pos & (HW - 1)) >> (W.bit_length() - 1)
    else:
        col = pos % W
        row = (pos % HW) // W
    row_ok = {-1: row >= 1, 0: None, 1: row < (H - 1)}
    col_ok = {-1: col >= 1, 0: None, 1: col < (W - 1)}

    # ---- conv2 (3x3, stride=1, pad=1) + bn2 + relu as 3 dy-group matmuls.
    # Taps are lane-rolls of t1 (XLU slot); the zero border ("SAME" padding)
    # is applied with the lane masks.  A roll may wrap into a neighbouring
    # row/image, but every such position is one the border mask zeroes, so
    # folding the whole batch into the lane axis stays correct.
    t2 = None
    for gi, dy in enumerate((-1, 0, 1)):
        taps = []
        for dx in (-1, 0, 1):
            s = dy * W + dx
            tap = pltpu.roll(t1, (-s) % L, 1) if s else t1
            cond = row_ok[dy]
            if col_ok[dx] is not None:
                cond = col_ok[dx] if cond is None else (cond & col_ok[dx])
            if cond is not None:
                tap = jnp.where(cond, tap, 0.0)
            taps.append(tap)
        taps_g = jnp.concatenate(taps, axis=0)                  # (3*Pp, L)
        part = jnp.dot(w2_ref[gi], taps_g, preferred_element_type=jnp.float32)
        t2 = part if t2 is None else t2 + part
    t2 = jnp.maximum(t2 + b2, 0.0)                              # (Pp, L)

    # ---- conv3 (1x1) + bn3, residual add (downsample is None), relu
    t3 = jnp.dot(w3_ref[...], t2, preferred_element_type=jnp.float32) + b3
    o_ref[...] = jnp.maximum(t3 + x, 0.0)


def bottleneck_forward_cl(x_cl, w1p, w2p, w3p, bp, *, H, W):
    """Layout-native entry point: x_cl is (Cin, N*H*W), channels on sublanes.

    Use this when chaining blocks so the NCHW transpose happens only once at
    the network boundary.  Returns (Cout, N*H*W).
    """
    Cin, L = x_cl.shape
    Cout = w3p.shape[0]
    assert Cout == Cin, "residual add requires inplanes == planes * expansion"
    return pl.pallas_call(
        partial(_bottleneck_kernel, H=H, W=W),
        out_shape=jax.ShapeDtypeStruct((Cout, L), jnp.float32),
    )(x_cl, w1p, w2p, w3p, bp)


@jax.jit
def bottleneck_forward(x, w1p, w2p, w3p, bp):
    """x: (N, Cin, H, W) float32 NCHW (PyTorch-native). Returns (N, Cout, H, W).

    Jitted so the wrapper-side NCHW <-> (C, L) layout plumbing fuses with the
    surrounding XLA ops instead of running as standalone HBM->HBM transposes.
    """
    N, Cin, H, W = x.shape
    x_cl = jnp.transpose(x, (1, 0, 2, 3)).reshape(Cin, N * H * W)
    out_cl = bottleneck_forward_cl(x_cl, w1p, w2p, w3p, bp, H=H, W=W)
    Cout = out_cl.shape[0]
    return jnp.transpose(out_cl.reshape(Cout, N, H, W), (1, 0, 2, 3))


def prepare_params(w1, w2, w3, bn1, bn2, bn3, eps=1e-5):
    """Fold eval-mode BN into conv weights and pack them in the kernel layout.

    w1: (P, Cin, 1, 1)  w2: (P, P, 3, 3)  w3: (Cout, P, 1, 1)   (PyTorch OIHW)
    bn*: (gamma, beta, running_mean, running_var)
    """
    g1, be1, m1, v1 = bn1
    g2, be2, m2, v2 = bn2
    g3, be3, m3, v3 = bn3
    s1 = g1 / jnp.sqrt(v1 + eps)
    s2 = g2 / jnp.sqrt(v2 + eps)
    s3 = g3 / jnp.sqrt(v3 + eps)

    P, Cin = w1.shape[0], w1.shape[1]
    Cout = w3.shape[0]
    Pp = max(8, ((P + 7) // 8) * 8)       # pad bottleneck width to full sublanes

    w1p = jnp.zeros((Pp, Cin), jnp.float32).at[:P].set(s1[:, None] * w1[:, :, 0, 0])
    b1p = jnp.zeros((Pp,), jnp.float32).at[:P].set(be1 - m1 * s1)

    w2s = s2[:, None, None, None] * w2                          # (P, P, 3, 3) OIHW
    w2pad = jnp.zeros((Pp, Pp, 3, 3), jnp.float32).at[:P, :P].set(w2s)
    # (O, I, kh, kw) -> (kh, O, kw, I) -> (3, Pp, 3*Pp): dy indexes the group,
    # group columns are (dx outer, in-channel minor) matching the in-kernel
    # tap order.
    w2p = jnp.transpose(w2pad, (2, 0, 3, 1)).reshape(3, Pp, 3 * Pp)
    b2p = jnp.zeros((Pp,), jnp.float32).at[:P].set(be2 - m2 * s2)

    w3p = jnp.zeros((Cout, Pp), jnp.float32).at[:, :P].set(s3[:, None] * w3[:, :, 0, 0])
    b3p = be3 - m3 * s3

    bp = jnp.concatenate([b1p, b2p, b3p]).reshape(2 * Pp + Cout, 1)
    return w1p, w2p, w3p, bp


def _ref_forward(x, w1, w2, w3, bn1, bn2, bn3, eps=1e-5):
    """Pure-JAX NCHW reference of the eval-mode PyTorch Bottleneck forward."""
    def bn(y, params):
        g, b, m, v = params
        inv = 1.0 / jnp.sqrt(v + eps)
        return (y - m[None, :, None, None]) * (g * inv)[None, :, None, None] \
            + b[None, :, None, None]

    dn = ('NCHW', 'OIHW', 'NCHW')
    out = lax.conv_general_dilated(x, w1, (1, 1), 'VALID', dimension_numbers=dn)
    out = jnp.maximum(bn(out, bn1), 0.0)
    out = lax.conv_general_dilated(out, w2, (1, 1), 'SAME', dimension_numbers=dn)
    out = jnp.maximum(bn(out, bn2), 0.0)
    out = lax.conv_general_dilated(out, w3, (1, 1), 'VALID', dimension_numbers=dn)
    out = bn(out, bn3)
    return jnp.maximum(out + x, 0.0)


if __name__ == "__main__":
    # Module config: inplanes=8, planes=4, expansion=2, stride=1, downsample=None.
    # TODO(synk): stride>1 / downsample branch not implemented (unused by this config).
    # TODO(synk): training-mode BatchNorm (batch stats + running-stat update) not implemented.
    N, H, W = 2, 16, 16
    inplanes, planes, expansion = 8, 4, 2
    outplanes = planes * expansion                # == inplanes -> residual valid

    key = jax.random.PRNGKey(0)
    ks = jax.random.split(key, 16)

    x = jax.random.normal(ks[0], (N, inplanes, H, W), jnp.float32)

    # Conv weights in PyTorch OIHW layout.
    w1 = 0.3 * jax.random.normal(ks[1], (planes, inplanes, 1, 1), jnp.float32)
    w2 = 0.2 * jax.random.normal(ks[2], (planes, planes, 3, 3), jnp.float32)
    w3 = 0.3 * jax.random.normal(ks[3], (outplanes, planes, 1, 1), jnp.float32)

    # Eval-mode BatchNorm parameters (gamma, beta, running_mean, running_var).
    bn1 = (1.0 + 0.1 * jax.random.normal(ks[4], (planes,), jnp.float32),
           0.1 * jax.random.normal(ks[5], (planes,), jnp.float32),
           0.1 * jax.random.normal(ks[6], (planes,), jnp.float32),
           jnp.abs(jax.random.normal(ks[7], (planes,), jnp.float32)) + 0.5)
    bn2 = (1.0 + 0.1 * jax.random.normal(ks[8], (planes,), jnp.float32),
           0.1 * jax.random.normal(ks[9], (planes,), jnp.float32),
           0.1 * jax.random.normal(ks[10], (planes,), jnp.float32),
           jnp.abs(jax.random.normal(ks[11], (planes,), jnp.float32)) + 0.5)
    bn3 = (jnp.linspace(0.9, 1.1, outplanes, dtype=jnp.float32),
           jnp.linspace(-0.05, 0.05, outplanes, dtype=jnp.float32),
           jnp.linspace(-0.1, 0.1, outplanes, dtype=jnp.float32),
           jnp.linspace(0.5, 1.5, outplanes, dtype=jnp.float32))

    params = prepare_params(w1, w2, w3, bn1, bn2, bn3)

    out = bottleneck_forward(x, *params)
    out = jax.block_until_ready(out)

    ref = _ref_forward(x, w1, w2, w3, bn1, bn2, bn3)
    assert out.shape == (N, outplanes, H, W)
    assert jnp.allclose(out, ref, rtol=1e-4, atol=1e-4), "mismatch vs reference"

    print("KERNEL_OK")
</pallas_src>

<mosaic_0001>
module attributes {stable_mosaic.version = 11 : i64} {
  func.func @_bottleneck_kernel(%arg0: memref<8x512xf32, #tpu.memory_space<vmem>>, %arg1: memref<8x8xf32, #tpu.memory_space<vmem>>, %arg2: memref<3x8x24xf32, #tpu.memory_space<vmem>>, %arg3: memref<8x8xf32, #tpu.memory_space<vmem>>, %arg4: memref<24x1xf32, #tpu.memory_space<vmem>>, %arg5: memref<8x512xf32, #tpu.memory_space<vmem>>) attributes {dimension_semantics = [], scalar_prefetch = 0 : i64, scratch_operands = 0 : i64, tpu.core_type = #tpu.core_type<tc>} {
    %c0 = arith.constant 0 : index
    %c0_0 = arith.constant 0 : index
    %0 = vector.load %arg4[%c0, %c0_0] : memref<24x1xf32, #tpu.memory_space<vmem>>, vector<8x1xf32>
    %c8 = arith.constant 8 : index
    %c0_1 = arith.constant 0 : index
    %1 = vector.load %arg4[%c8, %c0_1] : memref<24x1xf32, #tpu.memory_space<vmem>>, vector<8x1xf32>
    %c16 = arith.constant 16 : index
    %c0_2 = arith.constant 0 : index
    %2 = vector.load %arg4[%c16, %c0_2] : memref<24x1xf32, #tpu.memory_space<vmem>>, vector<8x1xf32>
    %c0_3 = arith.constant 0 : index
    %c0_4 = arith.constant 0 : index
    %3 = vector.load %arg0[%c0_3, %c0_4] : memref<8x512xf32, #tpu.memory_space<vmem>>, vector<8x512xf32>
    %c0_5 = arith.constant 0 : index
    %c0_6 = arith.constant 0 : index
    %4 = vector.load %arg1[%c0_5, %c0_6] : memref<8x8xf32, #tpu.memory_space<vmem>>, vector<8x8xf32>
    %cst = arith.constant dense<0.000000e+00> : vector<8x512xf32>
    %5 = tpu.matmul %4, %3, %cst {dimension_numbers = #tpu.dot_dimension_numbers<[1], [0], [0], [1], [0, 0, 1, 1], [], []>} : vector<8x8xf32>, vector<8x512xf32>, vector<8x512xf32> -> vector<8x512xf32>
    %6 = vector.broadcast %0 : vector<8x1xf32> to vector<8x512xf32>
    %7 = arith.addf %5, %6 : vector<8x512xf32>
    %cst_7 = arith.constant 0.000000e+00 : f32
    %8 = vector.broadcast %cst_7 : f32 to vector<8x512xf32>
    %9 = arith.maximumf %7, %8 : vector<8x512xf32>
    %10 = tpu.iota {dimensions = array<i32: 1>} : vector<1x512xi32>
    %c15_i32 = arith.constant 15 : i32
    %11 = vector.broadcast %c15_i32 : i32 to vector<1x512xi32>
    %12 = arith.andi %10, %11 : vector<1x512xi32>
    %c255_i32 = arith.constant 255 : i32
    %13 = vector.broadcast %c255_i32 : i32 to vector<1x512xi32>
    %14 = arith.andi %10, %13 : vector<1x512xi32>
    %c4_i32 = arith.constant 4 : i32
    %15 = vector.broadcast %c4_i32 : i32 to vector<1x512xi32>
    %16 = arith.shrsi %14, %15 : vector<1x512xi32>
    %c1_i32 = arith.constant 1 : i32
    %17 = vector.broadcast %c1_i32 : i32 to vector<1x512xi32>
    %18 = arith.cmpi sge, %16, %17 : vector<1x512xi32>
    %c15_i32_8 = arith.constant 15 : i32
    %19 = vector.broadcast %c15_i32_8 : i32 to vector<1x512xi32>
    %20 = arith.cmpi slt, %16, %19 : vector<1x512xi32>
    %c1_i32_9 = arith.constant 1 : i32
    %21 = vector.broadcast %c1_i32_9 : i32 to vector<1x512xi32>
    %22 = arith.cmpi sge, %12, %21 : vector<1x512xi32>
    %c15_i32_10 = arith.constant 15 : i32
    %23 = vector.broadcast %c15_i32_10 : i32 to vector<1x512xi32>
    %24 = arith.cmpi slt, %12, %23 : vector<1x512xi32>
    %c17_i32 = arith.constant 17 : i32
    %25 = tpu.dynamic_rotate %9 by %c17_i32 dim 1 : vector<8x512xf32>, i32 -> vector<8x512xf32>
    %26 = arith.andi %18, %22 : vector<1x512xi1>
    %cst_11 = arith.constant 0.000000e+00 : f32
    %27 = vector.shape_cast %26 : vector<1x512xi1> to vector<1x512xi1>
    %28 = vector.broadcast %27 : vector<1x512xi1> to vector<8x512xi1>
    %29 = vector.broadcast %cst_11 : f32 to vector<8x512xf32>
    %30 = arith.select %28, %25, %29 : vector<8x512xi1>, vector<8x512xf32>
    %c16_i32 = arith.constant 16 : i32
    %31 = tpu.dynamic_rotate %9 by %c16_i32 dim 1 : vector<8x512xf32>, i32 -> vector<8x512xf32>
    %cst_12 = arith.constant 0.000000e+00 : f32
    %32 = vector.shape_cast %18 : vector<1x512xi1> to vector<1x512xi1>
    %33 = vector.broadcast %32 : vector<1x512xi1> to vector<8x512xi1>
    %34 = vector.broadcast %cst_12 : f32 to vector<8x512xf32>
    %35 = arith.select %33, %31, %34 : vector<8x512xi1>, vector<8x512xf32>
    %c15_i32_13 = arith.constant 15 : i32
    %36 = tpu.dynamic_rotate %9 by %c15_i32_13 dim 1 : vector<8x512xf32>, i32 -> vector<8x512xf32>
    %37 = arith.andi %18, %24 : vector<1x512xi1>
    %cst_14 = arith.constant 0.000000e+00 : f32
    %38 = vector.shape_cast %37 : vector<1x512xi1> to vector<1x512xi1>
    %39 = vector.broadcast %38 : vector<1x512xi1> to vector<8x512xi1>
    %40 = vector.broadcast %cst_14 : f32 to vector<8x512xf32>
    %41 = arith.select %39, %36, %40 : vector<8x512xi1>, vector<8x512xf32>
    %42 = tpu.concatenate %30, %35, %41 in 0 : vector<8x512xf32>, vector<8x512xf32>, vector<8x512xf32> -> vector<24x512xf32>
    %c0_15 = arith.constant 0 : index
    %c0_16 = arith.constant 0 : index
    %c0_17 = arith.constant 0 : index
    %43 = vector.load %arg2[%c0_15, %c0_16, %c0_17] : memref<3x8x24xf32, #tpu.memory_space<vmem>>, vector<1x8x24xf32>
    %44 = vector.shape_cast %43 : vector<1x8x24xf32> to vector<8x24xf32>
    %cst_18 = arith.constant dense<0.000000e+00> : vector<8x512xf32>
    %45 = tpu.matmul %44, %42, %cst_18 {dimension_numbers = #tpu.dot_dimension_numbers<[1], [0], [0], [1], [0, 0, 1, 1], [], []>} : vector<8x24xf32>, vector<24x512xf32>, vector<8x512xf32> -> vector<8x512xf32>
    %c1_i32_19 = arith.constant 1 : i32
    %46 = tpu.dynamic_rotate %9 by %c1_i32_19 dim 1 : vector<8x512xf32>, i32 -> vector<8x512xf32>
    %cst_20 = arith.constant 0.000000e+00 : f32
    %47 = vector.shape_cast %22 : vector<1x512xi1> to vector<1x512xi1>
    %48 = vector.broadcast %47 : vector<1x512xi1> to vector<8x512xi1>
    %49 = vector.broadcast %cst_20 : f32 to vector<8x512xf32>
    %50 = arith.select %48, %46, %49 : vector<8x512xi1>, vector<8x512xf32>
    %c511_i32 = arith.constant 511 : i32
    %51 = tpu.dynamic_rotate %9 by %c511_i32 dim 1 : vector<8x512xf32>, i32 -> vector<8x512xf32>
    %cst_21 = arith.constant 0.000000e+00 : f32
    %52 = vector.shape_cast %24 : vector<1x512xi1> to vector<1x512xi1>
    %53 = vector.broadcast %52 : vector<1x512xi1> to vector<8x512xi1>
    %54 = vector.broadcast %cst_21 : f32 to vector<8x512xf32>
    %55 = arith.select %53, %51, %54 : vector<8x512xi1>, vector<8x512xf32>
    %56 = tpu.concatenate %50, %9, %55 in 0 : vector<8x512xf32>, vector<8x512xf32>, vector<8x512xf32> -> vector<24x512xf32>
    %c1 = arith.constant 1 : index
    %c0_22 = arith.constant 0 : index
    %c0_23 = arith.constant 0 : index
    %57 = vector.load %arg2[%c1, %c0_22, %c0_23] : memref<3x8x24xf32, #tpu.memory_space<vmem>>, vector<1x8x24xf32>
    %58 = vector.shape_cast %57 : vector<1x8x24xf32> to vector<8x24xf32>
    %cst_24 = arith.constant dense<0.000000e+00> : vector<8x512xf32>
    %59 = tpu.matmul %58, %56, %cst_24 {dimension_numbers = #tpu.dot_dimension_numbers<[1], [0], [0], [1], [0, 0, 1, 1], [], []>} : vector<8x24xf32>, vector<24x512xf32>, vector<8x512xf32> -> vector<8x512xf32>
    %60 = arith.addf %45, %59 : vector<8x512xf32>
    %c497_i32 = arith.constant 497 : i32
    %61 = tpu.dynamic_rotate %9 by %c497_i32 dim 1 : vector<8x512xf32>, i32 -> vector<8x512xf32>
    %62 = arith.andi %20, %22 : vector<1x512xi1>
    %cst_25 = arith.constant 0.000000e+00 : f32
    %63 = vector.shape_cast %62 : vector<1x512xi1> to vector<1x512xi1>
    %64 = vector.broadcast %63 : vector<1x512xi1> to vector<8x512xi1>
    %65 = vector.broadcast %cst_25 : f32 to vector<8x512xf32>
    %66 = arith.select %64, %61, %65 : vector<8x512xi1>, vector<8x512xf32>
    %c496_i32 = arith.constant 496 : i32
    %67 = tpu.dynamic_rotate %9 by %c496_i32 dim 1 : vector<8x512xf32>, i32 -> vector<8x512xf32>
    %cst_26 = arith.constant 0.000000e+00 : f32
    %68 = vector.shape_cast %20 : vector<1x512xi1> to vector<1x512xi1>
    %69 = vector.broadcast %68 : vector<1x512xi1> to vector<8x512xi1>
    %70 = vector.broadcast %cst_26 : f32 to vector<8x512xf32>
    %71 = arith.select %69, %67, %70 : vector<8x512xi1>, vector<8x512xf32>
    %c495_i32 = arith.constant 495 : i32
    %72 = tpu.dynamic_rotate %9 by %c495_i32 dim 1 : vector<8x512xf32>, i32 -> vector<8x512xf32>
    %73 = arith.andi %20, %24 : vector<1x512xi1>
    %cst_27 = arith.constant 0.000000e+00 : f32
    %74 = vector.shape_cast %73 : vector<1x512xi1> to vector<1x512xi1>
    %75 = vector.broadcast %74 : vector<1x512xi1> to vector<8x512xi1>
    %76 = vector.broadcast %cst_27 : f32 to vector<8x512xf32>
    %77 = arith.select %75, %72, %76 : vector<8x512xi1>, vector<8x512xf32>
    %78 = tpu.concatenate %66, %71, %77 in 0 : vector<8x512xf32>, vector<8x512xf32>, vector<8x512xf32> -> vector<24x512xf32>
    %c2 = arith.constant 2 : index
    %c0_28 = arith.constant 0 : index
    %c0_29 = arith.constant 0 : index
    %79 = vector.load %arg2[%c2, %c0_28, %c0_29] : memref<3x8x24xf32, #tpu.memory_space<vmem>>, vector<1x8x24xf32>
    %80 = vector.shape_cast %79 : vector<1x8x24xf32> to vector<8x24xf32>
    %cst_30 = arith.constant dense<0.000000e+00> : vector<8x512xf32>
    %81 = tpu.matmul %80, %78, %cst_30 {dimension_numbers = #tpu.dot_dimension_numbers<[1], [0], [0], [1], [0, 0, 1, 1], [], []>} : vector<8x24xf32>, vector<24x512xf32>, vector<8x512xf32> -> vector<8x512xf32>
    %82 = arith.addf %60, %81 : vector<8x512xf32>
    %83 = vector.broadcast %1 : vector<8x1xf32> to vector<8x512xf32>
    %84 = arith.addf %82, %83 : vector<8x512xf32>
    %cst_31 = arith.constant 0.000000e+00 : f32
    %85 = vector.broadcast %cst_31 : f32 to vector<8x512xf32>
    %86 = arith.maximumf %84, %85 : vector<8x512xf32>
    %c0_32 = arith.constant 0 : index
    %c0_33 = arith.constant 0 : index
    %87 = vector.load %arg3[%c0_32, %c0_33] : memref<8x8xf32, #tpu.memory_space<vmem>>, vector<8x8xf32>
    %cst_34 = arith.constant dense<0.000000e+00> : vector<8x512xf32>
    %88 = tpu.matmul %87, %86, %cst_34 {dimension_numbers = #tpu.dot_dimension_numbers<[1], [0], [0], [1], [0, 0, 1, 1], [], []>} : vector<8x8xf32>, vector<8x512xf32>, vector<8x512xf32> -> vector<8x512xf32>
    %89 = vector.broadcast %2 : vector<8x1xf32> to vector<8x512xf32>
    %90 = arith.addf %88, %89 : vector<8x512xf32>
    %91 = arith.addf %90, %3 : vector<8x512xf32>
    %cst_35 = arith.constant 0.000000e+00 : f32
    %92 = vector.broadcast %cst_35 : f32 to vector<8x512xf32>
    %93 = arith.maximumf %91, %92 : vector<8x512xf32>
    %c0_36 = arith.constant 0 : index
    %c0_37 = arith.constant 0 : index
    %94 = vector.load %arg5[%c0_36, %c0_37] : memref<8x512xf32, #tpu.memory_space<vmem>>, vector<8x512xf32>
    tpu.vector_store %arg5[%c0_36, %c0_37], %93 {strides = array<i32>} : memref<8x512xf32, #tpu.memory_space<vmem>>, vector<8x512xf32>,
    return
  }
}

</mosaic_0001>

<bundles_post_ra>
// kernel: bottleneck_forward.1
= control target key start
LH: loop header
LB: loop body
LE: loop exit
PB: predicated region body
PF: predicated region fallthrough
CT: control target
= control target key end

     0   :  { %v1113_v3 = vmov 0.0   ;;  %vm1583_vm0 = vcmask 64512   ;;  %v1114_v7 = vmov 0   ;;  %s1117_s30 = smov 15   ;;  %s1118_s6 = smov 16   ;;  %v183_v23 = vlaneseq  ;;  %s1577_s0 = inlined_call_operand.vmem [shape: f32[8,512], index: 0, kind: input, shape index: {}]   ;;  %s1578_s1 = inlined_call_operand.vmem [shape: f32[8,8], index: 1, kind: input, shape index: {}]   ;;  %s1579_s4 = inlined_call_operand.vmem [shape: f32[24,1], index: 4, kind: input, shape index: {}]   ;;  %s1580_s2 = inlined_call_operand.vmem [shape: f32[3,8,24], index: 2, kind: input, shape index: {}]   ;;  %s1581_s3 = inlined_call_operand.vmem [shape: f32[8,8], index: 3, kind: input, shape index: {}]   ;;  %s1582_s5 = inlined_call_operand.vmem [shape: f32[8,512], index: 5, kind: output, shape index: {}]  }
   0x1   :  { %v1156_v0 = vld [vmem:[%s1577_s0 + $0x8] sm:$0xff]  ;;  %v1161_v1 = vld [vmem:[%s1577_s0 + $0x18] sm:$0xff]  ;;  %v1166_v2 = vld [vmem:[%s1577_s0] sm:$0xff]  ;;  %101 = vmatprep.mubr.f32.mxu0 %v1113_v3  ;;  %172 = vmatprep.mubr.f32.mxu1 %v1113_v3  ;;  %s1119_s7 = smov 17   ;;  %s1120_s8 = smov 111   ;;  %vm352_vm7 = vcmask 195584  }
   0x2   :  { %67 = vmatprep.subr.mxu0 %v1156_v0  ;;  %138 = vmatprep.subr.mxu1 %v1161_v1  ;;  %v1175_v4 = vld [vmem:[%s1577_s0 + $0x10] sm:$0xff]  ;;  %v27_v5 = vld [vmem:[%s1578_s1] sm:$0xff]  ;;  %s1115_s0 = smov 127   ;;  %s1116_s1 = smov 1   ;;  %v21_v22 = vld [vmem:[%s1579_s4 + $0x8] sm:$0xff]  ;;  %v1229_v24 = vand.u32 127, %v183_v23 }
   0x3   :  { %68 = vmatpush1.msra.mxu0 %v1166_v2  ;;  %139 = vmatpush1.msra.mxu1 %v1175_v4  ;;  %v20_v6 = vld [vmem:[%s1579_s4] sm:$0xff]  ;;  %s1121_s9 = smov 112   ;;  %s1122_s10 = smov 113   ;;  %v22_v21 = vld [vmem:[%s1579_s4 + $0x10] sm:$0xff]  ;;  %v1282_v47 = vld [vmem:[%s1580_s2 + $0x8] sm:$0xff] }
   0x4   :  { %1057 = vmatmul.mubr.msk.f32.vlgmr.msra.gmra.mxu0 %vm1583_vm0, %v27_v5  ;;  %1058 = vmatmul.mubr.msk.f32.vlgmr.msra.gmra.mxu1 %vm1583_vm0, %v27_v5  ;;  %v187_v25 = vadd.s32 384, %v1229_v24  ;;  %v186_v26 = vadd.s32 256, %v1229_v24  ;;  %vm333_vm1 = vcmp.lt.s32.totalorder %v1229_v24, 127  ;;  %vm308_vm4 = vcmp.lt.s32.totalorder %v1229_v24, 1 }
   0x5   :  { %1111 = vset.pattern.permute.xlu0 %v1114_v7  ;;  %491 = vmatprep.mubr.f32.mxu1 %v1113_v3  ;;  %vm278_vm10 = vcmp.lt.s32.totalorder %v1229_v24, 15  ;;  %vm253_vm13 = vcmp.lt.s32.totalorder %v1229_v24, 16  ;;  %vm1584_vm14 = vcmp.lt.s32.totalorder %v1229_v24, 17  ;;  %v185_v5 = vadd.s32 128, %v1229_v24 }
   0x6   :  { %30 = vperm.xlu0 %1111, %v20_v6   ;;  %420 = vmatprep.mubr.f32.mxu0 %v1113_v3  ;;  %v191_v27 = vand.u32 15, %v187_v25  ;;  %v190_v30 = vand.u32 15, %v186_v26  ;;  %v195_v39 = vand.u32 255, %v187_v25  ;;  %v194_v40 = vand.u32 255, %v186_v26 }
   0x7   :  { %1112 = vset.pattern.permute.xlu1 %v1114_v7 }
   0x8   :  { %vm1238_vm2 = vcmp.lt.s32.totalorder %v191_v27, 15  ;;  %vm1244_vm3 = vcmp.lt.s32.totalorder %v190_v30, 15  ;;  %vm1262_vm5 = vcmp.ge.s32.totalorder %v191_v27, 1  ;;  %vm1270_vm6 = vcmp.ge.s32.totalorder %v190_v30, 1 }
   0x9   :  { %v1274_v45 = vshra.s32 %v195_v39, 4  ;;  %v1284_v48 = vshra.s32 %v194_v40, 4 }
   0xb   :  { %vm203_vm8 = vcmp.ge.s32.totalorder %v1274_v45, 1  ;;  %vm202_vm9 = vcmp.ge.s32.totalorder %v1284_v48, 1 }
   0xc   :  { %vm286_vm11 = vmand %vm203_vm8, %vm1238_vm2 }
   0xd   :  { %vm285_vm12 = vmand %vm202_vm9, %vm1244_vm3 }
   0xe   :  { %vm232_vm15 = vmand %vm203_vm8, %vm1262_vm5 }
  0x81   :  { %v31_v8 = vpop.permute.xlu0 %30 }
  0xc4   :  { %v103_v9 = vpop.f32.mrf.mxu0  ;;  %v174_v10 = vpop.f32.mrf.mxu1 }
  0xc5   :  { %v104_v11 = vadd.f32 %v103_v9, %v31_v8  ;;  %v175_v12 = vadd.f32 %v174_v10, %v31_v8  ;;  %v1358_v9 = vld [vmem:[%s1580_s2] sm:$0xff] }
  0xc6   :  { %v176_v13 = vpop.f32.mrf.mxu1  ;;  %v105_v17 = vpop.f32.mrf.mxu0 }
  0xc7   :  { %v1189_v14 = vmax.f32 %v104_v11, 0.0  ;;  %v1191_v15 = vmax.f32 %v175_v12, 0.0  ;;  %v177_v16 = vadd.f32 %v176_v13, %v31_v8  ;;  %v106_v18 = vadd.f32 %v105_v17, %v31_v8 }
  0xc8   :  { %v193_v11 = vand.u32 255, %v185_v5  ;;  %v189_v12 = vand.u32 15, %v185_v5  ;;  %v192_v13 = vand.u32 255, %v1229_v24  ;;  %v188_v17 = vand.u32 15, %v1229_v24 }
  0xc9   :  { %329 = vrot.lane.b32.xlu1 %v1191_v15, %s1115_s0  ;;  %325 = vrot.lane.b32.xlu0 %v1189_v14, %s1115_s0  ;;  %v182_v19 = vmax.f32 %v177_v16, 0.0  ;;  %v1199_v20 = vmax.f32 %v106_v18, 0.0 }
  0xca   :  { %v1374_v18 = vshra.s32 %v193_v11, 4  ;;  %vm1387_vm0 = vcmp.lt.s32.totalorder %v188_v17, 15 }
  0xcd   :  { %300 = vrot.lane.b32.xlu1 %v1189_v14, %s1116_s1  ;;  %331 = vrot.lane.b32.xlu0 %v182_v19, %s1115_s0 }
  0xd1   :  { %304 = vrot.lane.b32.xlu1 %v1191_v15, %s1116_s1  ;;  %302 = vrot.lane.b32.xlu0 %v1199_v20, %s1116_s1 }
  0xd5   :  { %270 = vrot.lane.b32.xlu1 %v1189_v14, %s1117_s30  ;;  %306 = vrot.lane.b32.xlu0 %v182_v19, %s1116_s1 }
  0xd9   :  { %274 = vrot.lane.b32.xlu1 %v1191_v15, %s1117_s30  ;;  %272 = vrot.lane.b32.xlu0 %v1199_v20, %s1117_s30 }
  0xdd   :  { %245 = vrot.lane.b32.xlu1 %v1189_v14, %s1118_s6  ;;  %276 = vrot.lane.b32.xlu0 %v182_v19, %s1117_s30 }
  0xe1   :  { %249 = vrot.lane.b32.xlu1 %v1191_v15, %s1118_s6  ;;  %247 = vrot.lane.b32.xlu0 %v1199_v20, %s1118_s6 }
  0xe5   :  { %216 = vrot.lane.b32.xlu1 %v1189_v14, %s1119_s7  ;;  %251 = vrot.lane.b32.xlu0 %v182_v19, %s1118_s6 }
  0xe9   :  { %220 = vrot.lane.b32.xlu1 %v1191_v15, %s1119_s7  ;;  %218 = vrot.lane.b32.xlu0 %v1199_v20, %s1119_s7 }
  0xed   :  { %697 = vrot.lane.b32.xlu1 %v1189_v14, %s1120_s8  ;;  %222 = vrot.lane.b32.xlu0 %v182_v19, %s1119_s7 }
  0xf1   :  { %701 = vrot.lane.b32.xlu1 %v1191_v15, %s1120_s8  ;;  %699 = vrot.lane.b32.xlu0 %v1199_v20, %s1120_s8 }
  0xf5   :  { %327 = vrot.lane.b32.xlu1 %v1199_v20, %s1115_s0  ;;  %703 = vrot.lane.b32.xlu0 %v182_v19, %s1120_s8 }
  0xf9   :  { %672 = vrot.lane.b32.xlu1 %v1189_v14, %s1121_s9  ;;  %674 = vrot.lane.b32.xlu0 %v1199_v20, %s1121_s9 }
  0xfd   :  { %676 = vrot.lane.b32.xlu1 %v1191_v15, %s1121_s9  ;;  %678 = vrot.lane.b32.xlu0 %v182_v19, %s1121_s9 }
 0x101   :  { %643 = vrot.lane.b32.xlu1 %v1189_v14, %s1122_s10  ;;  %645 = vrot.lane.b32.xlu0 %v1199_v20, %s1122_s10 }
 0x105   :  { %647 = vrot.lane.b32.xlu1 %v1191_v15, %s1122_s10  ;;  %649 = vrot.lane.b32.xlu0 %v182_v19, %s1122_s10 }
 0x109   :  { %893 = vperm.xlu0 %1111, %v22_v21   ;;  %879 = vperm.xlu1 %1112, %v21_v22   ;;  %v1384_v21 = vshra.s32 %v192_v13, 4 }
 0x13b   :  { %v1233_v28 = vpop.permute.xlu1 %329  ;;  %v1235_v29 = vpop.permute.xlu0 %325 }
 0x13f   :  { %v1242_v32 = vpop.permute.xlu1 %300  ;;  %v332_v33 = vpop.permute.xlu0 %331 }
 0x140   :  { %v334_v35 = vsel %vm333_vm1, %v1233_v28, %v332_v33  ;;  %v337_v36 = vsel %vm333_vm1, %v332_v33, %v1235_v29 }
 0x141   :  { %1065 = vmatprep.subr.msk.mxu1 %vm1238_vm2, %v337_v36 }
 0x142   :  { %1066 = vmatpush1.msk.msra.mxu1 %vm1244_vm3, %v334_v35 }
 0x143   :  { %v305_v37 = vpop.permute.xlu1 %304  ;;  %455 = vmatprep.subr.mxu1 %v182_v19  ;;  %v1258_v38 = vpop.permute.xlu0 %302 }
 0x144   :  { %456 = vmatpush1.msra.mxu1 %v1191_v15  ;;  %v310_v49 = vsel %vm308_vm4, %v1258_v38, %v305_v37  ;;  %v311_v35 = vsel %vm308_vm4, %v1242_v32, %v1258_v38 }
 0x147   :  { %v1266_v42 = vpop.permute.xlu1 %270  ;;  %v1268_v43 = vpop.permute.xlu0 %306 }
 0x148   :  { %v309_v46 = vsel %vm308_vm4, %v305_v37, %v1268_v43 }
 0x149   :  { %1067 = vmatprep.subr.msk.mxu1 %vm1262_vm5, %v309_v46 }
 0x14a   :  { %1068 = vmatpush1.msk.msra.mxu1 %vm1270_vm6, %v310_v49 }
 0x14b   :  { %v275_v50 = vpop.permute.xlu1 %274  ;;  %v1293_v51 = vpop.permute.xlu0 %272  ;;  %1069 = vmatmul.mubr.msk.f32.vlgmr.msra.gmra.mxu1 %vm352_vm7, %v1282_v47 }
 0x14c   :  { %636 = vmatprep.mubr.f32.mxu1 %v1113_v3  ;;  %v280_v55 = vsel %vm278_vm10, %v1293_v51, %v275_v50 }
 0x14f   :  { %v1305_v52 = vpop.permute.xlu1 %245  ;;  %v1307_v53 = vpop.permute.xlu0 %276 }
 0x150   :  { %v279_v54 = vsel %vm278_vm10, %v275_v50, %v1307_v53 }
 0x151   :  { %1077 = vmatprep.subr.msk.mxu1 %vm286_vm11, %v279_v54  ;;  %vm231_vm11 = vmand %vm202_vm9, %vm1270_vm6 }
 0x152   :  { %1078 = vmatpush1.msk.msra.mxu1 %vm285_vm12, %v280_v55  ;;  %vm1376_vm12 = vcmp.lt.s32.totalorder %v189_v12, 15 }
 0x153   :  { %v250_v56 = vpop.permute.xlu1 %249  ;;  %v1319_v57 = vpop.permute.xlu0 %247 }
 0x154   :  { %v255_v61 = vsel %vm253_vm13, %v1319_v57, %v250_v56  ;;  %v256_v38 = vsel %vm253_vm13, %v1305_v52, %v1319_v57 }
 0x157   :  { %v1322_v58 = vpop.permute.xlu1 %216  ;;  %v1324_v59 = vpop.permute.xlu0 %251 }
 0x158   :  { %v254_v60 = vsel %vm253_vm13, %v250_v56, %v1324_v59 }
 0x159   :  { %1079 = vmatprep.subr.msk.mxu1 %vm203_vm8, %v254_v60  ;;  %vm1588_vm8 = vcmp.lt.s32.totalorder %v1274_v45, 15 }
 0x15a   :  { %1080 = vmatpush1.msk.msra.mxu1 %vm202_vm9, %v255_v61  ;;  %vm1586_vm9 = vcmp.lt.s32.totalorder %v1284_v48, 15 }
 0x15b   :  { %v221_v62 = vpop.permute.xlu1 %220  ;;  %v1336_v63 = vpop.permute.xlu0 %218 }
 0x15c   :  { %v226_v10 = vsel %vm1584_vm14, %v1336_v63, %v221_v62 }
 0x15f   :  { %v1344_v6 = vpop.permute.xlu1 %697  ;;  %v1346_v7 = vpop.permute.xlu0 %222 }
 0x160   :  { %v225_v8 = vsel %vm1584_vm14, %v221_v62, %v1346_v7  ;;  %vm712_vm14 = vmand %vm1586_vm9, %vm1244_vm3  ;;  %vm1412_vm3 = vcmp.ge.s32.totalorder %v189_v12, 1  ;;  %vm205_vm9 = vcmp.lt.s32.totalorder %v1374_v18, 15 }
 0x161   :  { %1081 = vmatprep.subr.msk.mxu1 %vm232_vm15, %v225_v8  ;;  %vm713_vm15 = vmand %vm1588_vm8, %vm1238_vm2  ;;  %vm201_vm2 = vcmp.ge.s32.totalorder %v1374_v18, 1 }
 0x162   :  { %1082 = vmatpush1.msk.msra.mxu1 %vm231_vm11, %v226_v10  ;;  %vm1585_vm11 = vcmp.lt.s32.totalorder %v1229_v24, 111 }
 0x163   :  { %v1364_v15 = vpop.permute.xlu1 %701  ;;  %v1366_v16 = vpop.permute.xlu0 %699  ;;  %1083 = vmatmul.mubr.msk.f32.vlgmr.msra.gmra.mxu1 %vm352_vm7, %v1358_v9 }
 0x164   :  { %866 = vmatprep.mubr.f32.mxu1 %v1113_v3 }
 0x167   :  { %v328_v22 = vpop.permute.xlu1 %327  ;;  %v704_v23 = vpop.permute.xlu0 %703 }
 0x168   :  { %v335_v26 = vsel %vm333_vm1, %v328_v22, %v1233_v28  ;;  %v336_v27 = vsel %vm333_vm1, %v1235_v29, %v328_v22  ;;  %v706_v30 = vsel %vm1585_vm11, %v1364_v15, %v704_v23  ;;  %v709_v31 = vsel %vm1585_vm11, %v704_v23, %v1344_v6  ;;  %v890_v28 = vld [vmem:[%s1581_s3] sm:$0xff] }
 0x169   :  { %1060 = vmatprep.subr.msk.mxu0 %vm1376_vm12, %v335_v26  ;;  %1092 = vmatprep.subr.msk.mxu1 %vm713_vm15, %v709_v31  ;;  %vm200_vm1 = vcmp.ge.s32.totalorder %v1384_v21, 1  ;;  %vm1418_vm11 = vcmp.ge.s32.totalorder %v188_v17, 1 }
 0x16a   :  { %1061 = vmatpush1.msk.msra.mxu0 %vm1387_vm0, %v336_v27  ;;  %1093 = vmatpush1.msk.msra.mxu1 %vm712_vm14, %v706_v30  ;;  %vm284_vm14 = vmand %vm201_vm2, %vm1376_vm12 }
 0x16b   :  { %v673_v29 = vpop.permute.xlu1 %672  ;;  %384 = vmatprep.subr.mxu0 %v1199_v20  ;;  %v675_v33 = vpop.permute.xlu0 %674  ;;  %v312_v20 = vsel %vm308_vm4, %v1268_v43, %v1242_v32  ;;  %vm283_vm15 = vmand %vm200_vm1, %vm1387_vm0  ;;  %v282_v32 = vsel %vm278_vm10, %v1307_v53, %v1266_v42  ;;  %vm1587_vm4 = vcmp.lt.s32.totalorder %v1229_v24, 112 }
 0x16c   :  { %385 = vmatpush1.msra.mxu0 %v1189_v14  ;;  %v281_v14 = vsel %vm278_vm10, %v1266_v42, %v1293_v51  ;;  %vm230_vm10 = vmand %vm201_vm2, %vm1412_vm3  ;;  %v257_v42 = vsel %vm253_vm13, %v1324_v59, %v1305_v52  ;;  %vm1606_vm13 = vcmp.lt.s32.totalorder %v1284_v48, 15 }
 0x16d   :  { %1062 = vmatprep.subr.msk.mxu0 %vm1412_vm3, %v311_v35 }
 0x16e   :  { %1063 = vmatpush1.msk.msra.mxu0 %vm1418_vm11, %v312_v20 }
 0x16f   :  { %v677_v36 = vpop.permute.xlu1 %676  ;;  %1064 = vmatmul.mubr.msk.f32.vlgmr.msra.gmra.mxu0 %vm352_vm7, %v1282_v47  ;;  %1070 = vmatprep.subr.msk.mxu0 %vm284_vm14, %v281_v14  ;;  %v679_v37 = vpop.permute.xlu0 %678  ;;  %vm204_vm14 = vcmp.lt.s32.totalorder %v1384_v21, 15 }
 0x170   :  { %v681_v39 = vsel %vm1587_vm4, %v677_v36, %v679_v37  ;;  %v684_v40 = vsel %vm1587_vm4, %v679_v37, %v673_v29  ;;  %1071 = vmatpush1.msk.msra.mxu0 %vm283_vm15, %v282_v32  ;;  %565 = vmatprep.mubr.f32.mxu0 %v1113_v3  ;;  %vm229_vm15 = vmand %vm200_vm1, %vm1418_vm11  ;;  %vm1605_vm4 = vcmp.lt.s32.totalorder %v1229_v24, 17 }
 0x171   :  { %1072 = vmatprep.subr.msk.mxu0 %vm201_vm2, %v256_v38  ;;  %1094 = vmatprep.subr.msk.mxu1 %vm1588_vm8, %v684_v40  ;;  %v227_v43 = vsel %vm1605_vm4, %v1322_v58, %v1336_v63  ;;  %vm711_vm2 = vmand %vm205_vm9, %vm1376_vm12 }
 0x172   :  { %1073 = vmatpush1.msk.msra.mxu0 %vm200_vm1, %v257_v42  ;;  %1095 = vmatpush1.msk.msra.mxu1 %vm1606_vm13, %v681_v39  ;;  %vm1607_vm8 = vmmov %vm1605_vm4  ;;  %vm1608_vm4 = vcmp.lt.s32.totalorder %v1229_v24, 111 }
 0x173   :  { %v228_v46 = vsel %vm1607_vm8, %v1346_v7, %v1322_v58  ;;  %v644_v47 = vpop.permute.xlu1 %643  ;;  %1074 = vmatprep.subr.msk.mxu0 %vm230_vm10, %v227_v43  ;;  %v646_v49 = vpop.permute.xlu0 %645  ;;  %vm710_vm1 = vmand %vm204_vm14, %vm1387_vm0  ;;  %v707_v50 = vsel %vm1608_vm4, %v1366_v16, %v1364_v15  ;;  %vm1612_vm0 = vcmp.lt.s32.totalorder %v1274_v45, 15 }
 0x174   :  { %1075 = vmatpush1.msk.msra.mxu0 %vm229_vm15, %v228_v46  ;;  %vm1509_vm12 = vmand %vm205_vm9, %vm1412_vm3  ;;  %vm1615_vm3 = vcmp.lt.s32.totalorder %v1229_v24, 112  ;;  %vm651_vm15 = vcmp.lt.s32.totalorder %v1229_v24, 113  ;;  %v1084_v24 = vld [vmem:[%s1580_s2 + $0x10] sm:$0xff] }
 0x175   :  { %vm1611_vm8 = vmmov %vm1608_vm4  ;;  %1076 = vmatmul.mubr.msk.f32.vlgmr.msra.gmra.mxu0 %vm352_vm7, %v1358_v9  ;;  %1085 = vmatprep.subr.msk.mxu0 %vm711_vm2, %v707_v50  ;;  %v682_v54 = vsel %vm1615_vm3, %v675_v33, %v677_v36  ;;  %v654_v59 = vsel %vm651_vm15, %v644_v47, %v646_v49 }
 0x176   :  { %v708_v52 = vsel %vm1611_vm8, %v1344_v6, %v1366_v16  ;;  %vm1523_vm10 = vmand %vm1612_vm0, %vm1262_vm5  ;;  %795 = vmatprep.mubr.f32.mxu0 %v1113_v3  ;;  %vm1617_vm5 = vcmp.lt.s32.totalorder %v1284_v48, 15 }
 0x177   :  { %1086 = vmatpush1.msk.msra.mxu0 %vm710_vm1, %v708_v52  ;;  %vm656_vm13 = vmand %vm204_vm14, %vm1418_vm11  ;;  %v648_v45 = vpop.permute.xlu1 %647  ;;  %v650_v55 = vpop.permute.xlu0 %649 }
 0x178   :  { %vm1616_vm2 = vmmov %vm1615_vm3  ;;  %1087 = vmatprep.subr.msk.mxu0 %vm205_vm9, %v682_v54  ;;  %v653_v56 = vsel %vm651_vm15, %v646_v49, %v648_v45  ;;  %v652_v57 = vsel %vm651_vm15, %v648_v45, %v650_v55  ;;  %v655_v58 = vsel %vm651_vm15, %v650_v55, %v644_v47 }
 0x179   :  { %v683_v41 = vsel %vm1616_vm2, %v673_v29, %v675_v33  ;;  %vm658_vm1 = vmand %vm1617_vm5, %vm1270_vm6  ;;  %1096 = vmatprep.subr.msk.mxu1 %vm1523_vm10, %v655_v58  ;;  %vm1618_vm6 = vcmask 64512  }
 0x17a   :  { %1088 = vmatpush1.msk.msra.mxu0 %vm204_vm14, %v683_v41  ;;  %1097 = vmatpush1.msk.msra.mxu1 %vm658_vm1, %v652_v57 }
 0x17b   :  { %1089 = vmatprep.subr.msk.mxu0 %vm1509_vm12, %v653_v56  ;;  %1098 = vmatmul.mubr.msk.f32.vlgmr.msra.gmra.mxu1 %vm352_vm7, %v1084_v24 }
 0x17c   :  { %1090 = vmatpush1.msk.msra.mxu0 %vm656_vm13, %v654_v59  ;;  %1034 = vmatprep.mubr.f32.mxu1 %v1113_v3 }
 0x17d   :  { %1091 = vmatmul.mubr.msk.f32.vlgmr.msra.gmra.mxu0 %vm352_vm7, %v1084_v24  ;;  %vm1619_vm7 = vmmov %vm1618_vm6 }
 0x17e   :  { %963 = vmatprep.mubr.f32.mxu0 %v1113_v3 }
 0x184   :  { %v880_v16 = vpop.permute.xlu1 %879  ;;  %v894_v29 = vpop.permute.xlu0 %893 }
 0x20b   :  { %v493_v44 = vpop.f32.mrf.mxu1 }
 0x20d   :  { %v495_v60 = vpop.f32.mrf.mxu1 }
 0x223   :  { %v638_v62 = vpop.f32.mrf.mxu1 }
 0x224   :  { %v639_v7 = vadd.f32 %v638_v62, %v493_v44 }
 0x225   :  { %v640_v5 = vpop.f32.mrf.mxu1 }
 0x226   :  { %v641_v11 = vadd.f32 %v640_v5, %v495_v60 }
 0x22f   :  { %v422_v48 = vpop.f32.mrf.mxu0 }
 0x231   :  { %v424_v61 = vpop.f32.mrf.mxu0 }
 0x235   :  { %v567_v63 = vpop.f32.mrf.mxu0 }
 0x236   :  { %v568_v8 = vadd.f32 %v567_v63, %v422_v48 }
 0x237   :  { %v569_v6 = vpop.f32.mrf.mxu0 }
 0x238   :  { %v570_v12 = vadd.f32 %v569_v6, %v424_v61 }
 0x23b   :  { %v868_v10 = vpop.f32.mrf.mxu1 }
 0x23c   :  { %v875_v15 = vadd.f32 %v868_v10, %v639_v7 }
 0x23d   :  { %v797_v9 = vpop.f32.mrf.mxu0  ;;  %v870_v18 = vpop.f32.mrf.mxu1 }
 0x23e   :  { %v873_v13 = vadd.f32 %v797_v9, %v568_v8  ;;  %v876_v19 = vadd.f32 %v870_v18, %v641_v11  ;;  %v884_v22 = vadd.f32 %v880_v16, %v875_v15 }
 0x23f   :  { %v799_v17 = vpop.f32.mrf.mxu0 }
 0x240   :  { %v874_v3 = vadd.f32 %v799_v17, %v570_v12  ;;  %v882_v21 = vadd.f32 %v880_v16, %v873_v13  ;;  %v885_v25 = vadd.f32 %v880_v16, %v876_v19  ;;  %v888_v31 = vmax.f32 %v884_v22, 0.0 }
 0x242   :  { %v883_v23 = vadd.f32 %v880_v16, %v874_v3  ;;  %v889_v27 = vmax.f32 %v885_v25, 0.0  ;;  %v886_v30 = vmax.f32 %v882_v21, 0.0 }
 0x244   :  { %v887_v26 = vmax.f32 %v883_v23, 0.0  ;;  %1000 = vmatprep.subr.mxu1 %v889_v27 }
 0x245   :  { %1001 = vmatpush1.msra.mxu1 %v888_v31 }
 0x246   :  { %929 = vmatprep.subr.mxu0 %v887_v26  ;;  %1100 = vmatmul.mubr.msk.f32.vlgmr.msra.gmra.mxu1 %vm1619_vm7, %v890_v28 }
 0x247   :  { %930 = vmatpush1.msra.mxu0 %v886_v30 }
 0x248   :  { %1099 = vmatmul.mubr.msk.f32.vlgmr.msra.gmra.mxu0 %vm1618_vm6, %v890_v28 }
 0x306   :  { %v1036_v34 = vpop.f32.mrf.mxu1 }
 0x307   :  { %v1037_v20 = vadd.f32 %v1036_v34, %v894_v29 }
 0x308   :  { %v965_v33 = vpop.f32.mrf.mxu0  ;;  %v1038_v32 = vpop.f32.mrf.mxu1 }
 0x309   :  { %v966_v35 = vadd.f32 %v965_v33, %v894_v29  ;;  %v1043_v37 = vadd.f32 %v1037_v20, %v1175_v4  ;;  %v1039_v39 = vadd.f32 %v1038_v32, %v894_v29 }
 0x30a   :  { %v967_v14 = vpop.f32.mrf.mxu0 }
 0x30b   :  { %v1041_v36 = vadd.f32 %v966_v35, %v1166_v2  ;;  %v968_v38 = vadd.f32 %v967_v14, %v894_v29  ;;  %v1047_v42 = vmax.f32 %v1043_v37, 0.0  ;;  %v1044_v46 = vadd.f32 %v1039_v39, %v1161_v1 }
 0x30d   :  { %v1045_v40 = vmax.f32 %v1041_v36, 0.0  ;;  %v1042_v43 = vadd.f32 %v968_v38, %v1156_v0  ;;  %1051 = vst [vmem:[%s1582_s5 + $0x10] sm:$0xff] %v1047_v42  ;;  %v1048_v2 = vmax.f32 %v1044_v46, 0.0 }
 0x30f   :  { %1049 = vst [vmem:[%s1582_s5] sm:$0xff] %v1045_v40  ;;  %v1046_v47 = vmax.f32 %v1042_v43, 0.0  ;;  %1052 = vst [vmem:[%s1582_s5 + $0x18] sm:$0xff] %v1048_v2 }
 0x311   :  { %1050 = vst [vmem:[%s1582_s5 + $0x8] sm:$0xff] %v1046_v47 }

</bundles_post_ra>
